<compile_context>
chip_gen: v5e
topology: v5e:2x2
jax: 0.10.0
libtpu: 0.0.40
codegen_flags: <defaults>
</compile_context>

<pallas_src>
import math

import jax
import jax.numpy as jnp
from jax.experimental import pallas as pl
from jax.experimental.pallas import tpu as pltpu


_VMEM_LIMIT_BYTES = 48 * 1024 * 1024  # > v5e scoped default (16 MiB), < v7x physical (64 MiB)


def _round_up(a, b):
    return ((a + b - 1) // b) * b


# ---------------------------------------------------------------------------
# Stage 1: support = x @ W   (row-tiled, W resident)
# ---------------------------------------------------------------------------
def _support_kernel(x_ref, w_ref, sup_ref):
    sup_ref[...] = jnp.dot(
        x_ref[...], w_ref[...], preferred_element_type=jnp.float32
    ).astype(sup_ref.dtype)


# ---------------------------------------------------------------------------
# Stage 2: out = adj @ support (+ bias)   (adj tiled (tm, tk); reduction over k)
# ---------------------------------------------------------------------------
def _adj_step(adj_ref, sup_ref, b_ref, out_ref, acc_ref):
    k = pl.program_id(1)
    tk = adj_ref.shape[1]

    @pl.when(k == 0)
    def _init():
        acc_ref[...] = jnp.zeros_like(acc_ref)

    start = pl.multiple_of(k * tk, tk)
    acc_ref[...] += jnp.dot(
        adj_ref[...], sup_ref[pl.ds(start, tk), :],
        preferred_element_type=jnp.float32,
    )

    @pl.when(k == pl.num_programs(1) - 1)
    def _finalize():
        acc = acc_ref[...]
        if b_ref is not None:                       # bias applied exactly once per tile
            acc = acc + b_ref[...].astype(jnp.float32)
        out_ref[...] = acc.astype(out_ref.dtype)


def _adj_kernel_nobias(adj_ref, sup_ref, out_ref, acc_ref):
    _adj_step(adj_ref, sup_ref, None, out_ref, acc_ref)


def _adj_kernel_bias(adj_ref, sup_ref, b_ref, out_ref, acc_ref):
    _adj_step(adj_ref, sup_ref, b_ref, out_ref, acc_ref)


# ---------------------------------------------------------------------------
# Wrapper
# ---------------------------------------------------------------------------
def graph_convolution(x, adj, weight, bias=None, *, tm=256, tk=512,
                      min_pallas_nodes=512, force_pallas=False):
    """Fused GCN layer: adj @ (x @ weight) [+ bias].

    x:      [N, in_features]
    adj:    [N, N]
    weight: [in_features, out_features]
    bias:   optional [1, 1, out_features] (PyTorch layout), broadcast over rows.
    """
    n, din = x.shape
    dout = weight.shape[1]
    assert adj.shape == (n, n), "adj must be [N, N] matching x's row count"

    bias2d = None if bias is None else bias.reshape(1, dout)

    # Small-problem fast path: a Pallas dispatch is pure overhead vs XLA's fused dots.
    if n < min_pallas_nodes and not force_pallas:
        out = adj @ (x @ weight)
        if bias2d is not None:
            out = out + bias2d
        return out.astype(x.dtype)

    # ---- tile / padding bookkeeping ------------------------------------
    tm = min(tm, _round_up(n, 8))      # row block (sublane axis): multiple of 8
    tk = min(tk, _round_up(n, 128))    # reduction block (lane axis): multiple of 128
    dout_p = _round_up(dout, 128)      # lane-dense output (unmasked vst)
    n_rows = _round_up(n, tm)          # padded adj rows / output rows
    n_red = _round_up(n, tk)           # padded reduction extent (adj cols, x rows)

    x_p = x if n_red == n else jnp.pad(x, ((0, n_red - n), (0, 0)))
    w_p = weight if dout_p == dout else jnp.pad(weight, ((0, 0), (0, dout_p - dout)))
    adj_p = adj
    if n_rows != n or n_red != n:
        adj_p = jnp.pad(adj, ((0, n_rows - n), (0, n_red - n)))

    # ---- stage 1: support = x @ W (f32, lane-dense), computed once -----
    support = pl.pallas_call(
        _support_kernel,
        out_shape=jax.ShapeDtypeStruct((n_red, dout_p), jnp.float32),
        grid=(n_red // tk,),
        in_specs=[
            pl.BlockSpec((tk, din), lambda i: (i, 0)),
            pl.BlockSpec((din, dout_p), lambda i: (0, 0)),
        ],
        out_specs=pl.BlockSpec((tk, dout_p), lambda i: (i, 0)),
        compiler_params=pltpu.CompilerParams(
            dimension_semantics=("parallel",),
            vmem_limit_bytes=_VMEM_LIMIT_BYTES,
        ),
    )(x_p, w_p)

    # ---- stage 2: out = adj @ support (+ bias) --------------------------
    in_specs = [
        pl.BlockSpec((tm, tk), lambda i, k: (i, k)),           # adj tile (streamed)
        pl.BlockSpec((n_red, dout_p), lambda i, k: (0, 0)),    # support (VMEM resident)
    ]
    args = [adj_p, support]
    if bias2d is not None:
        b_p = bias2d if dout_p == dout else jnp.pad(bias2d, ((0, 0), (0, dout_p - dout)))
        in_specs.append(pl.BlockSpec((1, dout_p), lambda i, k: (0, 0)))
        args.append(b_p)
        kernel = _adj_kernel_bias
    else:
        kernel = _adj_kernel_nobias

    out_p = pl.pallas_call(
        kernel,
        out_shape=jax.ShapeDtypeStruct((n_rows, dout_p), x.dtype),
        grid=(n_rows // tm, n_red // tk),
        in_specs=in_specs,
        out_specs=pl.BlockSpec((tm, dout_p), lambda i, k: (i, 0)),
        scratch_shapes=[pltpu.VMEM((tm, dout_p), jnp.float32)],
        compiler_params=pltpu.CompilerParams(
            dimension_semantics=("parallel", "arbitrary"),
            vmem_limit_bytes=_VMEM_LIMIT_BYTES,
        ),
    )(*args)

    return out_p[:n, :dout]


def init_params(key, in_features, out_features, bias=False, dtype=jnp.float32):
    """Deterministic replica of GraphConvolution.reset_parameters()."""
    stdv = 1.0 / math.sqrt(out_features)
    kw, kb = jax.random.split(key)
    weight = jax.random.uniform(
        kw, (in_features, out_features), dtype=dtype, minval=-stdv, maxval=stdv
    )
    b = None
    if bias:
        b = jax.random.uniform(
            kb, (1, 1, out_features), dtype=dtype, minval=-stdv, maxval=stdv
        )
    return weight, b


if __name__ == "__main__":
    key = jax.random.PRNGKey(0)
    k_x, k_adj, k_p = jax.random.split(key, 3)

    # Small-but-nontrivial GCN shapes (a label graph); deliberately NOT tile-aligned
    # so the padding + multi-step reduction paths are exercised.
    N, IN_FEATURES, OUT_FEATURES = 200, 64, 48

    x = jax.random.normal(k_x, (N, IN_FEATURES), dtype=jnp.float32)
    adj = jax.random.normal(k_adj, (N, N), dtype=jnp.float32)

    weight, _ = init_params(k_p, IN_FEATURES, OUT_FEATURES, bias=False)
    weight_b, bias_b = init_params(k_p, IN_FEATURES, OUT_FEATURES, bias=True)

    # force_pallas=True so the Pallas kernels (not the small-N jnp fast path) run;
    # small tiles so the grid has multiple row blocks and reduction steps.
    out = graph_convolution(x, adj, weight, None, tm=64, tk=128, force_pallas=True)
    out = jax.block_until_ready(out)
    ref = adj @ (x @ weight)
    assert out.shape == (N, OUT_FEATURES)
    assert jnp.allclose(out, ref, atol=1e-3, rtol=1e-4), float(jnp.max(jnp.abs(out - ref)))

    # Bias path through the Pallas kernels.
    out_b = graph_convolution(x, adj, weight_b, bias_b, tm=64, tk=128, force_pallas=True)
    out_b = jax.block_until_ready(out_b)
    ref_b = adj @ (x @ weight_b) + bias_b.reshape(1, OUT_FEATURES)
    assert jnp.allclose(out_b, ref_b, atol=1e-3, rtol=1e-4)

    # Default dispatch (tiny N -> fused XLA fast path) must agree as well.
    out_fast = jax.block_until_ready(graph_convolution(x, adj, weight, None))
    assert jnp.allclose(out_fast, ref, atol=1e-3, rtol=1e-4)

    print("KERNEL_OK")
</pallas_src>

<mosaic_0001>
module attributes {stable_mosaic.version = 11 : i64} {
  func.func @_support_kernel(%arg0: i32, %arg1: memref<128x64xf32, #tpu.memory_space<vmem>>, %arg2: memref<64x128xf32, #tpu.memory_space<vmem>>, %arg3: memref<128x128xf32, #tpu.memory_space<vmem>>) attributes {dimension_semantics = [#tpu.dimension_semantics<parallel>], iteration_bounds = array<i64: 2>, scalar_prefetch = 0 : i64, scratch_operands = 0 : i64, tpu.core_type = #tpu.core_type<tc>, window_params = [{transform_indices = @transform_0, window_bounds = array<i64: 128, 64>}, {pipeline_mode = #tpu.pipeline_mode<synchronous>, transform_indices = @transform_1, window_bounds = array<i64: 64, 128>}, {transform_indices = @transform_2, window_bounds = array<i64: 128, 128>}]} {
    %c0 = arith.constant 0 : index
    %c0_0 = arith.constant 0 : index
    %0 = vector.load %arg1[%c0, %c0_0] : memref<128x64xf32, #tpu.memory_space<vmem>>, vector<128x64xf32>
    %c0_1 = arith.constant 0 : index
    %c0_2 = arith.constant 0 : index
    %1 = vector.load %arg2[%c0_1, %c0_2] : memref<64x128xf32, #tpu.memory_space<vmem>>, vector<64x128xf32>
    %cst = arith.constant dense<0.000000e+00> : vector<128x128xf32>
    %2 = tpu.matmul %0, %1, %cst {dimension_numbers = #tpu.dot_dimension_numbers<[1], [0], [0], [1], [0, 0, 1, 1], [], []>} : vector<128x64xf32>, vector<64x128xf32>, vector<128x128xf32> -> vector<128x128xf32>
    %c0_3 = arith.constant 0 : index
    %c0_4 = arith.constant 0 : index
    %3 = vector.load %arg3[%c0_3, %c0_4] : memref<128x128xf32, #tpu.memory_space<vmem>>, vector<128x128xf32>
    tpu.vector_store %arg3[%c0_3, %c0_4], %2 {strides = array<i32>} : memref<128x128xf32, #tpu.memory_space<vmem>>, vector<128x128xf32>,
    return
  }
  func.func @transform_0(%arg0: i32) -> (i32, i32) {
    %c0_i32 = arith.constant 0 : i32
    %c0_i32_0 = arith.constant 0 : i32
    return %arg0, %c0_i32 : i32, i32
  }
  func.func @transform_1(%arg0: i32) -> (i32, i32) {
    %c0_i32 = arith.constant 0 : i32
    %c0_i32_0 = arith.constant 0 : i32
    %c0_i32_1 = arith.constant 0 : i32
    return %c0_i32, %c0_i32_0 : i32, i32
  }
  func.func @transform_2(%arg0: i32) -> (i32, i32) {
    %c0_i32 = arith.constant 0 : i32
    %c0_i32_0 = arith.constant 0 : i32
    return %arg0, %c0_i32 : i32, i32
  }
}

</mosaic_0001>

<bundles_post_ra>
// kernel: tpu_custom_call.1
= control target key start
LH: loop header
LB: loop body
LE: loop exit
PB: predicated region body
PF: predicated region fallthrough
CT: control target
= control target key end

     0   :  { %7 = vsyncpa [#allocation3], 0  ;;  %s717_s0 = inlined_call_operand.vmem [shape: f32[256,64], index: 0, kind: input, shape index: {}]   ;;  %s718_s1 = inlined_call_operand.vmem [shape: f32[64,128], index: 1, kind: input, shape index: {}]   ;;  %s719_s2 = inlined_call_operand.hbm [shape: f32[256,128], index: 2, kind: output, shape index: {}]  }
   0x1   :  { %9 = vsyncpa [#allocation3 + $0x1], 0  ;;  %s552_s9 = smov 0   ;;  %s554_s10 = smov 0  }
   0x2   :  { %s556_s11 = smov 0   ;;  %s558_s12 = smov 0  }
   0x3 LB: > { %s573_s13 = sadd.s32 4294967295, %s533_s12   ;;  %s377_s14 = sadd.s32 4294967294, %s533_s12   ;;  %s533_s12 = sphi %s558_s12, %s725_s12   ;;  %s529_s11 = sphi %s556_s11, %s724_s11   ;;  %s525_s10 = sphi %s554_s10, %s723_s10   ;;  %s521_s9 = sphi %s552_s9, %s722_s9  }
   0x4   : > { %s577_s15 = sadd.s32 1, %s533_s12   ;;  %s69_s16 = sadd.s32 1, %s529_s11 }
   0x5   : > { %s66_s17 = ssub.s32 %s533_s12, %s577_s15  ;;  %p79_p0 = scmp.ne.s32.totalorder %s529_s11, %s525_s10 }
   0x6   : > { %p67_p1 = scmp.eq.s32.totalorder %s66_s17, 0  ;;  %p80_p2 = scmp.eq.s32.totalorder %s573_s13, 1 }
   0x7   : > { %p85_p3 = scmp.ne.s32.totalorder %s525_s10, %s521_s9  ;;  %p86_p4 = scmp.eq.s32.totalorder %s377_s14, 1 }
   0x8   : > { %s588_s18 = scalar_select %p67_p1, %s529_s11, %s69_s16  }
   0x9   : > { %p590_p5 = por %p80_p2, %p79_p0  ;;  %p594_p6 = por %p86_p4, %p85_p3 }
   0xa   : > { %p380_p7 = scmp.ge.s32.totalorder %s533_s12, 1  ;;  %p116_p8 = scmp.lt.s32.totalorder %s533_s12, 3 }
   0xc   : > { %p117_p9 = pnand %p380_p7, %p116_p8 }
   0xd   : > { %s382_s25 = sshll.u32 (!%p117_p9), %s573_s13, 4  ;;  %s135_s23 = sand.u32 (!%p117_p9), 1, %s525_s10  }
   0xe   : > { %120 = sbr.rel (%p117_p9) target bundleno = 196 (0xc4), region = 28  ;;  %p139_p10 = scmp.lt.s32.totalorder (!%p117_p9), %s382_s25, 31 }
   0xf   : > { %s381_s24 = sshll.u32 (!%p117_p9), %s135_s23, 7  ;;  %s405_s26 = sshll.u32 (!%p117_p9), %s573_s13, 7 }
  0x10   : > { %s311_s29 = scalar_lea.hbm (!%p117_p9), %s719_s2, %s405_s26  ;;  %s300_s13 = scalar_lea.sflag (!%p117_p9), [#allocation3], %s135_s23 }
  0x11   : > { %s314_s3 = sshll.u32 (!%p117_p9), %s311_s29, 4  ;;  %s491_s8 = scalar_lea.hbm (!%p117_p9), %s719_s2, 256  ;;  %s315_s3 = int_to_ptr.hbm [resolvable:$true] %s314_s3 }
  0x13   : > { %v168_v0 = vld [vmem:[%s718_s1 + $0x38] sm:$0xff]  ;;  %v167_v1 = vld [vmem:[%s718_s1 + $0x30] sm:$0xff]  ;;  %v166_v2 = vld [vmem:[%s718_s1 + $0x28] sm:$0xff]  ;;  %s727_s25 = smov (!%p139_p10, %s382_s25), 31  ;;  %vm169_vm0 = vcmask 523264  }
  0x14   : > { %407 = vmatpush.msra.mxu2 %v168_v0  ;;  %408 = vmatpush.msra.mxu3 %v168_v0  ;;  %v165_v3 = vld [vmem:[%s718_s1 + $0x20] sm:$0xff]  ;;  %v164_v4 = vld [vmem:[%s718_s1 + $0x18] sm:$0xff]  ;;  %s383_s4 = sshll.u32 %s727_s25, 3  ;;  %v163_v5 = vld [vmem:[%s718_s1 + $0x10] sm:$0xff]  ;;  %s665_s25 = scalar_lea.vmem [#allocation2], %s381_s24 }
  0x15   : > { %226 = vmatpush.msra.mxu0 %v168_v0  ;;  %406 = vmatpush.msra.mxu1 %v168_v0  ;;  %v162_v6 = vld [vmem:[%s718_s1 + $0x8] sm:$0xff]  ;;  %s625_s17 = scalar_lea.vmem %s717_s0, %s383_s4  ;;  %v161_v7 = vld [vmem:[%s718_s1] sm:$0xff]  ;;  %s312_s30 = sshll.u32 %s665_s25, 4  ;;  %s313_s30 = int_to_ptr.vmem [resolvable:$true] %s312_s30 }
  0x16   : > { %410 = vmatpush.msra.mxu2 %v167_v1  ;;  %411 = vmatpush.msra.mxu3 %v167_v1  ;;  %v153_v8 = vld [vmem:[%s625_s17 + $0x40] sm:$0xff]  ;;  %v154_v12 = vld [vmem:[%s625_s17 + $0x48] sm:$0xff]  ;;  %v155_v16 = vld [vmem:[%s625_s17 + $0x50] sm:$0xff]  ;;  %s485_s4 = sshra.s32 %s315_s3, 4  ;;  %s486_s4 = int_to_ptr.hbm [resolvable:$true] %s485_s4 }
  0x17   : > { %227 = vmatpush.msra.mxu0 %v167_v1  ;;  %409 = vmatpush.msra.mxu1 %v167_v1  ;;  %v157_v9 = vld [vmem:[%s625_s17 + $0x60] sm:$0xff]  ;;  %v158_v13 = vld [vmem:[%s625_s17 + $0x68] sm:$0xff]  ;;  %v159_v17 = vld [vmem:[%s625_s17 + $0x70] sm:$0xff]  ;;  %s487_s5 = scalar_lea.hbm %s486_s4, 128  ;;  %p492_p0 = scmp.lt.s32.totalorder %s486_s4, %s719_s2 }
  0x18   : > { %413 = vmatpush.msra.mxu2 %v166_v2  ;;  %414 = vmatpush.msra.mxu3 %v166_v2  ;;  %v145_v10 = vld [vmem:[%s625_s17] sm:$0xff]  ;;  %v146_v14 = vld [vmem:[%s625_s17 + $0x8] sm:$0xff]  ;;  %v147_v18 = vld [vmem:[%s625_s17 + $0x10] sm:$0xff]  ;;  %p488_p11 = scmp.ne.s32.totalorder %s486_s4, %s487_s5  ;;  %p493_p1 = scmp.lt.s32.totalorder %s491_s8, %s487_s5 }
  0x19   : > { %228 = vmatpush.msra.mxu0 %v166_v2  ;;  %412 = vmatpush.msra.mxu1 %v166_v2  ;;  %v149_v11 = vld [vmem:[%s625_s17 + $0x20] sm:$0xff]  ;;  %v150_v15 = vld [vmem:[%s625_s17 + $0x28] sm:$0xff]  ;;  %v151_v19 = vld [vmem:[%s625_s17 + $0x30] sm:$0xff] }
  0x1a   : > { %416 = vmatpush.msra.mxu2 %v165_v3  ;;  %417 = vmatpush.msra.mxu3 %v165_v3  ;;  %v156_v20 = vld [vmem:[%s625_s17 + $0x58] sm:$0xff]  ;;  %p489_p12 = pnand %p488_p11, %p590_p5  ;;  %p494_p2 = por %p493_p1, %p492_p0 }
  0x1b   : > { %229 = vmatpush.msra.mxu0 %v165_v3  ;;  %415 = vmatpush.msra.mxu1 %v165_v3  ;;  %v160_v21 = vld [vmem:[%s625_s17 + $0x78] sm:$0xff] }
  0x1c   : > { %419 = vmatpush.msra.mxu2 %v164_v4  ;;  %420 = vmatpush.msra.mxu3 %v164_v4  ;;  %v148_v22 = vld [vmem:[%s625_s17 + $0x18] sm:$0xff]  ;;  %p490_p13 = pneg %p489_p12 }
  0x1d   : > { %230 = vmatpush.msra.mxu0 %v164_v4  ;;  %418 = vmatpush.msra.mxu1 %v164_v4  ;;  %v152_v23 = vld [vmem:[%s625_s17 + $0x38] sm:$0xff] }
  0x1e   : > { %422 = vmatpush.msra.mxu2 %v163_v5  ;;  %423 = vmatpush.msra.mxu3 %v163_v5  ;;  %p495_p3 = pnand %p494_p2, %p490_p13 }
  0x1f   : > { %231 = vmatpush.msra.mxu0 %v163_v5  ;;  %421 = vmatpush.msra.mxu1 %v163_v5 }
  0x20   : > { %425 = vmatpush.msra.mxu2 %v162_v6  ;;  %426 = vmatpush.msra.mxu3 %v162_v6 }
  0x21   : > { %232 = vmatpush.msra.mxu0 %v162_v6  ;;  %424 = vmatpush.msra.mxu1 %v162_v6 }
  0x22   : > { %428 = vmatpush.msra.mxu2 %v161_v7  ;;  %429 = vmatpush.msra.mxu3 %v161_v7 }
  0x23   : > { %392 = vmatmul.msk.f32.vlgmr.msra.gmra.mxu2 %vm169_vm0, %v153_v8  ;;  %396 = vmatmul.msk.f32.vlgmr.msra.gmra.mxu3 %vm169_vm0, %v157_v9 }
  0x24   : > { %233 = vmatpush.msra.mxu0 %v161_v7  ;;  %427 = vmatpush.msra.mxu1 %v161_v7 }
  0x25   : > { %384 = vmatmul.msk.f32.vlgmr.msra.gmra.mxu0 %vm169_vm0, %v145_v10  ;;  %388 = vmatmul.msk.f32.vlgmr.msra.gmra.mxu1 %vm169_vm0, %v149_v11 }
  0x2b   : > { %393 = vmatmul.msk.f32.gmra.mxu2 %vm169_vm0, %v154_v12  ;;  %397 = vmatmul.msk.f32.gmra.mxu3 %vm169_vm0, %v158_v13 }
  0x2d   : > { %385 = vmatmul.msk.f32.gmra.mxu0 %vm169_vm0, %v146_v14  ;;  %389 = vmatmul.msk.f32.gmra.mxu1 %vm169_vm0, %v150_v15 }
  0x33   : > { %394 = vmatmul.msk.f32.gmra.mxu2 %vm169_vm0, %v155_v16  ;;  %398 = vmatmul.msk.f32.gmra.mxu3 %vm169_vm0, %v159_v17 }
  0x35   : > { %386 = vmatmul.msk.f32.gmra.mxu0 %vm169_vm0, %v147_v18  ;;  %390 = vmatmul.msk.f32.gmra.mxu1 %vm169_vm0, %v151_v19 }
  0x3b   : > { %395 = vmatmul.msk.f32.gmra.mxu2 %vm169_vm0, %v156_v20  ;;  %399 = vmatmul.msk.f32.gmra.mxu3 %vm169_vm0, %v160_v21 }
  0x3d   : > { %387 = vmatmul.msk.f32.gmra.mxu0 %vm169_vm0, %v148_v22  ;;  %391 = vmatmul.msk.f32.gmra.mxu1 %vm169_vm0, %v152_v23 }
  0xa2   : > { %v235_v24 = vpop.f32.mrf.mxu0  ;;  %v247_v25 = vpop.f32.mrf.mxu1 }
  0xa3   : > { %283 = vst [vmem:[%s665_s25] sm:$0xff] %v235_v24 }
  0xa4   : > { %287 = vst [vmem:[%s665_s25 + $0x20] sm:$0xff] %v247_v25 }
  0xa6   : > { %v259_v26 = vpop.f32.mrf.mxu2  ;;  %v271_v27 = vpop.f32.mrf.mxu3 }
  0xa7   : > { %291 = vst [vmem:[%s665_s25 + $0x40] sm:$0xff] %v259_v26 }
  0xa8   : > { %295 = vst [vmem:[%s665_s25 + $0x60] sm:$0xff] %v271_v27 }
  0xaa   : > { %v238_v28 = vpop.f32.mrf.mxu0  ;;  %v250_v29 = vpop.f32.mrf.mxu1 }
  0xab   : > { %284 = vst [vmem:[%s665_s25 + $0x8] sm:$0xff] %v238_v28 }
  0xac   : > { %288 = vst [vmem:[%s665_s25 + $0x28] sm:$0xff] %v250_v29 }
  0xae   : > { %v262_v30 = vpop.f32.mrf.mxu2  ;;  %v274_v31 = vpop.f32.mrf.mxu3 }
  0xaf   : > { %292 = vst [vmem:[%s665_s25 + $0x48] sm:$0xff] %v262_v30 }
  0xb0   : > { %296 = vst [vmem:[%s665_s25 + $0x68] sm:$0xff] %v274_v31 }
  0xb2   : > { %v241_v32 = vpop.f32.mrf.mxu0  ;;  %v253_v33 = vpop.f32.mrf.mxu1 }
  0xb3   : > { %285 = vst [vmem:[%s665_s25 + $0x10] sm:$0xff] %v241_v32 }
  0xb4   : > { %289 = vst [vmem:[%s665_s25 + $0x30] sm:$0xff] %v253_v33 }
  0xb6   : > { %v265_v34 = vpop.f32.mrf.mxu2  ;;  %v277_v35 = vpop.f32.mrf.mxu3 }
  0xb7   : > { %293 = vst [vmem:[%s665_s25 + $0x50] sm:$0xff] %v265_v34 }
  0xb8   : > { %297 = vst [vmem:[%s665_s25 + $0x70] sm:$0xff] %v277_v35 }
  0xba   : > { %v244_v36 = vpop.f32.mrf.mxu0  ;;  %v256_v37 = vpop.f32.mrf.mxu1 }
  0xbb   : > { %286 = vst [vmem:[%s665_s25 + $0x18] sm:$0xff] %v244_v36 }
  0xbc   : > { %290 = vst [vmem:[%s665_s25 + $0x38] sm:$0xff] %v256_v37 }
  0xbe   : > { %v268_v38 = vpop.f32.mrf.mxu2  ;;  %v280_v39 = vpop.f32.mrf.mxu3 }
  0xbf   : > { %294 = vst [vmem:[%s665_s25 + $0x58] sm:$0xff] %v268_v38 }
  0xc0   : > { %298 = vst [vmem:[%s665_s25 + $0x78] sm:$0xff] %v280_v39 }
  0xc1   : > { %498 = shalt.err (!%p495_p3)
}
  0xc2   : > { %s535_s17 = smov 128   ;;  %s536_s21 = smov 8  }
  0xc3   : > { %430 = dma.vmem_to_hbm [thread:$0]  (%p590_p5), %s313_s30, 2048, %s315_s3, %s300_s13, %s535_s17, %s535_s17, %s536_s21  }
  0xc4 PF: > { %p436_p4 = scmp.ge.s32.totalorder %s533_s12, 2  ;;  %s329_s22 = sand.u32 1, %s521_s9  }
  0xc5   : > { %s330_s23 = scalar_lea.sflag [#allocation3], %s329_s22 }
  0xc6   : > { %p433_p7 = pnand %p436_p4, %p594_p6 }
  0xc8   : > { %p434_p8 = pneg %p433_p7 }
  0xca   : > { %516 = dma.done.wait (%p434_p8), %s330_s23, 2048  }
  0xcb   : > { %518 = vsyncadd (%p434_p8), %s330_s23, 4294965248  ;;  %p12_p9 = scmp.ge.s32.totalorder %s577_s15, 4   ;;  %s722_s9 = smov %s525_s10 }
  0xcc   : > { %s723_s10 = smov %s529_s11  ;;  %s724_s11 = smov %s588_s18 }
  0xcd   : > { %s725_s12 = smov %s577_s15  ;;  %14 = sbr.rel (!%p12_p9) target bundleno = 3 (0x3), region = 63 }
  0xd2   :  { %336 = vsyncpa [#allocation3], 1 }
  0xd3   :  { %338 = vsyncpa [#allocation3 + $0x1], 1 }

</bundles_post_ra>
